<compile_context>
chip_gen: v7x
topology: tpu7x:2x2x1
jax: 0.10.0
libtpu: 0.0.40
codegen_flags: <defaults>
</compile_context>

<pallas_src>
import jax
import jax.numpy as jnp
from jax.experimental import pallas as pl
from jax.experimental.pallas import tpu as pltpu

EPS = 1e-10        # clamp eps from AttentivePoolLayer
NEG_INF = -1e30    # finite sentinel: keeps the masked softmax NaN-free


def _attentive_pool_kernel(len_ref,               # scalar-prefetch: (Bp,) int32 lengths (SMEM)
                           x_ref,                 # (Bb, T, C) float32
                           w1_ref, b1_ref,        # (3C, A) mm_dtype, (1, A) f32
                           bns_ref, bnb_ref,      # (1, A), (1, A)   folded eval-mode BN
                           w2_ref, b2_ref,        # (A, C) mm_dtype, (1, C) f32
                           out_ref):              # (Bb, 2, C) float32
    Bb, T, C = x_ref.shape
    A = b1_ref.shape[-1]
    mm_dtype = w1_ref.dtype
    b0 = pl.program_id(0) * Bb

    x = x_ref[...]                                                # (Bb, T, C) f32

    # ---- lens_to_mask: per-row mask; num_values from the scalar length ----
    t_iota = jax.lax.broadcasted_iota(jnp.int32, (1, T), 1)       # (1, T)
    maskf_rows, m_rows = [], []
    for i in range(Bb):                                           # Bb is small & static
        li = len_ref[b0 + i]                                      # scalar i32 from SMEM
        row_maskf = (t_iota < li).astype(jnp.float32)             # (1, T)
        # clamp to [1, T]: guards length==0 (PyTorch would NaN here) and length > T
        nv = jnp.maximum(jnp.minimum(li, T), 1).astype(jnp.float32)
        maskf_rows.append(row_maskf)
        m_rows.append(row_maskf * (1.0 / nv))
    maskf = jnp.concatenate(maskf_rows, axis=0)                   # (Bb, T)
    m = jnp.concatenate(m_rows, axis=0)                           # (Bb, T) averaged mask

    # ---- masked mean / std via MXU, one-pass moments ----
    m3 = m[:, None, :]                                            # (Bb, 1, T)
    mean = jnp.einsum("bqt,btc->bqc", m3, x,
                      preferred_element_type=jnp.float32)[:, 0, :]          # (Bb, C)
    meansq = jnp.einsum("bqt,btc->bqc", m3, x * x,
                        preferred_element_type=jnp.float32)[:, 0, :]        # (Bb, C)
    std = jnp.sqrt(jnp.maximum(meansq - mean * mean, EPS))                  # (Bb, C)

    # ---- attention layer: Tdnn(Conv1d k=1 -> ReLU -> BN) -> Tanh -> Conv1d k=1 ----
    # cat([x, mean, std], channel) @ W1 == x@W1[:C] + mean@W1[C:2C] + std@W1[2C:];
    # the mean/std terms + conv bias are folded into one per-batch bias row.
    bias_row = (b1_ref[...]
                + jnp.dot(mean.astype(mm_dtype), w1_ref[C:2 * C, :],
                          preferred_element_type=jnp.float32)
                + jnp.dot(std.astype(mm_dtype), w1_ref[2 * C:3 * C, :],
                          preferred_element_type=jnp.float32))              # (Bb, A)

    x_flat = x.reshape(Bb * T, C).astype(mm_dtype)
    h = jnp.dot(x_flat, w1_ref[0:C, :], preferred_element_type=jnp.float32)  # (Bb*T, A)
    h = h.reshape(Bb, T, A) + bias_row[:, None, :]
    h = jnp.maximum(h, 0.0)                                       # ReLU
    h = h * bns_ref[...] + bnb_ref[...]                           # BatchNorm1d (eval, folded)
    h = jnp.tanh(h)                                               # Tanh (EUP)
    logits = jnp.dot(h.reshape(Bb * T, A).astype(mm_dtype), w2_ref[...],
                     preferred_element_type=jnp.float32) + b2_ref[...]       # (Bb*T, C)
    logits = logits.reshape(Bb, T, C)

    # ---- masked softmax over time (finite sentinel, approx reciprocal) ----
    logits = jnp.where(maskf[:, :, None] > 0.0, logits, NEG_INF)
    lmax = jnp.max(logits, axis=1, keepdims=True)                 # (Bb, 1, C)
    e = jnp.exp(logits - lmax)
    denom = jnp.sum(e, axis=1, keepdims=True)
    alpha = e * pl.reciprocal(denom, approx=True)                 # (Bb, T, C)

    # ---- attention-weighted mean / std, one-pass moments ----
    ax = alpha * x
    mu = jnp.sum(ax, axis=1)                                      # (Bb, C)
    second = jnp.sum(ax * x, axis=1)                              # (Bb, C)
    sg = jnp.sqrt(jnp.maximum(second - mu * mu, EPS))

    # separate slice stores; wrapper reshapes (Bb, 2, C) -> (Bb, 2C)
    out_ref[:, 0:1, :] = mu[:, None, :]
    out_ref[:, 1:2, :] = sg[:, None, :]


def attentive_pool_pallas(x_bct, params, length=None, *,
                          matmul_dtype=jnp.bfloat16, block_b=None):
    """x_bct: (B, C, T) float32; length: (B,) or None.  Returns (B, 2C, 1) float32."""
    B, C, T = x_bct.shape
    A = params["w1"].shape[1]
    if length is None:
        # PyTorch default: length = torch.ones(x.shape[0])
        length = jnp.ones((B,), dtype=jnp.float32)
    lengths_i32 = length.astype(jnp.int32)

    # Batch rows per grid step: amortize per-step overhead while keeping >=2 grid
    # steps (both v7x TensorCores busy) and a modest double-buffered x block.
    if block_b is None:
        block_b = max(1, B // 2)
        max_bb = max(1, (8 << 20) // (2 * T * C * 4))
        block_b = min(block_b, max_bb)
    block_b = max(1, min(block_b, max(B, 1)))

    Bp = ((B + block_b - 1) // block_b) * block_b
    x_btc = jnp.transpose(x_bct, (0, 2, 1)).astype(jnp.float32)   # channels-last (B, T, C)
    if Bp != B:
        x_btc = jnp.pad(x_btc, ((0, Bp - B), (0, 0), (0, 0)))
        lengths_i32 = jnp.pad(lengths_i32, (0, Bp - B), constant_values=T)

    mm_dtype = jnp.dtype(matmul_dtype)
    w1 = params["w1"].astype(mm_dtype)      # bf16 weights: 2x MXU rate, half the DMA
    w2 = params["w2"].astype(mm_dtype)
    b1 = params["b1"].astype(jnp.float32)
    bns = params["bn_scale"].astype(jnp.float32)
    bnb = params["bn_shift"].astype(jnp.float32)
    b2 = params["b2"].astype(jnp.float32)

    # Explicit VMEM budget (double-buffered x block + weights + f32 intermediates),
    # capped to stay inside v7x's 64 MiB physical VMEM.
    x_block_bytes = 2 * block_b * T * C * 4
    weight_bytes = 2 * (3 * C * A + A * C) * mm_dtype.itemsize + 8 * (3 * A + C) * 4
    work_bytes = block_b * T * (3 * C + 2 * A) * 4
    vmem_limit = int(min(64 << 20,
                         max(32 << 20,
                             x_block_bytes + weight_bytes + work_bytes + (8 << 20))))

    grid_spec = pltpu.PrefetchScalarGridSpec(
        num_scalar_prefetch=1,
        grid=(Bp // block_b,),
        in_specs=[
            pl.BlockSpec((block_b, T, C), lambda b, lens: (b, 0, 0)),    # x
            pl.BlockSpec((3 * C, A), lambda b, lens: (0, 0)),            # w1
            pl.BlockSpec((1, A), lambda b, lens: (0, 0)),                # b1
            pl.BlockSpec((1, A), lambda b, lens: (0, 0)),                # bn scale
            pl.BlockSpec((1, A), lambda b, lens: (0, 0)),                # bn shift
            pl.BlockSpec((A, C), lambda b, lens: (0, 0)),                # w2
            pl.BlockSpec((1, C), lambda b, lens: (0, 0)),                # b2
        ],
        out_specs=pl.BlockSpec((block_b, 2, C), lambda b, lens: (b, 0, 0)),
    )

    out = pl.pallas_call(
        _attentive_pool_kernel,
        out_shape=jax.ShapeDtypeStruct((Bp, 2, C), jnp.float32),
        grid_spec=grid_spec,
        compiler_params=pltpu.CompilerParams(
            dimension_semantics=("parallel",),
            vmem_limit_bytes=vmem_limit),
    )(lengths_i32, x_btc, w1, b1, bns, bnb, w2, b2)

    # (Bp, 2, C) -> (B, 2C, 1): row b is [mu_b | sg_b], matching
    # torch.cat((mu, sg), dim=1).unsqueeze(2).
    return out[:B].reshape(B, 2 * C)[:, :, None]


def attentive_pool_reference(x_bct, params, length=None):
    """Pure-JAX mirror of the PyTorch forward (NCT layout) for validation."""
    B, C, T = x_bct.shape
    if length is None:
        length = jnp.ones((B,), dtype=jnp.float32)
    t = jnp.arange(T)
    mask = (t[None, :] < length[:, None])[:, None, :]                     # (B,1,T)
    num_values = jnp.sum(mask, axis=2, keepdims=True).astype(jnp.float32)
    m = mask.astype(jnp.float32) / num_values
    mean = jnp.sum(m * x_bct, axis=2)
    std = jnp.sqrt(jnp.maximum(jnp.sum(m * (x_bct - mean[:, :, None]) ** 2, axis=2), EPS))
    attn = jnp.concatenate(
        [x_bct, jnp.repeat(mean[:, :, None], T, 2), jnp.repeat(std[:, :, None], T, 2)], axis=1)
    h = jnp.einsum("bit,io->bot", attn, params["w1"]) + params["b1"][0][None, :, None]
    h = jnp.maximum(h, 0.0)
    h = h * params["bn_scale"][0][None, :, None] + params["bn_shift"][0][None, :, None]
    h = jnp.tanh(h)
    logits = jnp.einsum("bat,ao->bot", h, params["w2"]) + params["b2"][0][None, :, None]
    logits = jnp.where(mask, logits, -jnp.inf)
    alpha = jax.nn.softmax(logits, axis=2)
    mu = jnp.sum(alpha * x_bct, axis=2)
    sg = jnp.sqrt(jnp.maximum(jnp.sum(alpha * (x_bct - mu[:, :, None]) ** 2, axis=2), EPS))
    return jnp.concatenate([mu, sg], axis=1)[:, :, None]


def make_params(key, inp_filters, attention_channels):
    """Deterministic synthetic parameters (kernel_size=1, dilation=1)."""
    C, A = inp_filters, attention_channels
    ks = jax.random.split(key, 8)
    # Conv1d(3C -> A, k=1): weight stored as (in=3C, out=A)  [== conv.weight[:, :, 0].T]
    w1 = (jax.random.normal(ks[0], (3 * C, A), jnp.float32) * 0.1)
    b1 = (jax.random.normal(ks[1], (1, A), jnp.float32) * 0.05)
    # BatchNorm1d(A), eval mode, folded: scale = gamma/sqrt(var+1e-5), shift = beta - mean*scale
    gamma = 1.0 + 0.1 * jax.random.normal(ks[2], (1, A), jnp.float32)
    beta = 0.05 * jax.random.normal(ks[3], (1, A), jnp.float32)
    run_mean = 0.05 * jax.random.normal(ks[4], (1, A), jnp.float32)
    run_var = jnp.abs(1.0 + 0.1 * jax.random.normal(ks[5], (1, A), jnp.float32))
    bn_scale = gamma / jnp.sqrt(run_var + 1e-5)
    bn_shift = beta - run_mean * bn_scale
    # Conv1d(A -> C, k=1): weight stored as (in=A, out=C)
    w2 = (jax.random.normal(ks[6], (A, C), jnp.float32) * 0.1)
    b2 = (jax.random.normal(ks[7], (1, C), jnp.float32) * 0.05)
    return dict(w1=w1, b1=b1, bn_scale=bn_scale, bn_shift=bn_shift, w2=w2, b2=b2)


if __name__ == "__main__":
    B, C, T = 4, 16, 16          # batch, inp_filters, time
    A = 32                       # attention_channels

    key = jax.random.PRNGKey(0)
    kx, kp = jax.random.split(key)
    x = jax.random.normal(kx, (B, C, T), jnp.float32)             # PyTorch NCT input
    lengths = jnp.array([T, T - 5, 7, T], dtype=jnp.float32)      # variable valid lengths
    params = make_params(kp, C, A)

    ref = attentive_pool_reference(x, params, lengths)

    # 1) f32 matmuls, one batch row per grid step: tight check vs the f32 reference.
    out_f32 = jax.block_until_ready(
        attentive_pool_pallas(x, params, lengths, matmul_dtype=jnp.float32, block_b=1))
    assert out_f32.shape == (B, 2 * C, 1), out_f32.shape
    assert jnp.allclose(out_f32, ref, atol=5e-3, rtol=5e-3), (
        "f32 mismatch vs reference", float(jnp.max(jnp.abs(out_f32 - ref))))

    # 2) Fast path: bf16 matmul inputs, 3 batch rows per grid step (exercises padding).
    out_bf16 = jax.block_until_ready(
        attentive_pool_pallas(x, params, lengths, block_b=3))
    assert out_bf16.shape == (B, 2 * C, 1), out_bf16.shape
    assert jnp.allclose(out_bf16, ref, atol=3e-2, rtol=3e-2), (
        "bf16 mismatch vs reference", float(jnp.max(jnp.abs(out_bf16 - ref))))

    # 3) length=None default (PyTorch: length = torch.ones(B) -> one valid frame).
    #    Looser tolerance: with one valid frame the variance sits at the eps clamp,
    #    where one-pass moments + approx reciprocal amplify rounding.
    out_default = jax.block_until_ready(attentive_pool_pallas(x, params, None))
    ref_default = attentive_pool_reference(x, params, None)
    assert out_default.shape == (B, 2 * C, 1), out_default.shape
    assert jnp.allclose(out_default, ref_default, atol=1e-1, rtol=1e-1), (
        "default-length mismatch", float(jnp.max(jnp.abs(out_default - ref_default))))

    print("KERNEL_OK")
</pallas_src>

<mosaic_0001>
module attributes {stable_mosaic.version = 11 : i64} {
  func.func @_attentive_pool_kernel(%arg0: i32, %arg1: memref<4xi32, #tpu.memory_space<smem>>, %arg2: memref<1x16x16xf32, #tpu.memory_space<vmem>>, %arg3: memref<48x32xf32, #tpu.memory_space<vmem>>, %arg4: memref<1x32xf32, #tpu.memory_space<vmem>>, %arg5: memref<1x32xf32, #tpu.memory_space<vmem>>, %arg6: memref<1x32xf32, #tpu.memory_space<vmem>>, %arg7: memref<32x16xf32, #tpu.memory_space<vmem>>, %arg8: memref<1x16xf32, #tpu.memory_space<vmem>>, %arg9: memref<1x2x16xf32, #tpu.memory_space<vmem>>) attributes {dimension_semantics = [#tpu.dimension_semantics<parallel>], iteration_bounds = array<i64: 4>, scalar_prefetch = 1 : i64, scratch_operands = 0 : i64, tpu.core_type = #tpu.core_type<tc>, window_params = [{transform_indices = @transform_0, window_bounds = array<i64: 1, 16, 16>}, {pipeline_mode = #tpu.pipeline_mode<synchronous>, transform_indices = @transform_1, window_bounds = array<i64: 48, 32>}, {pipeline_mode = #tpu.pipeline_mode<synchronous>, transform_indices = @transform_2, window_bounds = array<i64: 1, 32>}, {pipeline_mode = #tpu.pipeline_mode<synchronous>, transform_indices = @transform_3, window_bounds = array<i64: 1, 32>}, {pipeline_mode = #tpu.pipeline_mode<synchronous>, transform_indices = @transform_4, window_bounds = array<i64: 1, 32>}, {pipeline_mode = #tpu.pipeline_mode<synchronous>, transform_indices = @transform_5, window_bounds = array<i64: 32, 16>}, {pipeline_mode = #tpu.pipeline_mode<synchronous>, transform_indices = @transform_6, window_bounds = array<i64: 1, 16>}, {transform_indices = @transform_7, window_bounds = array<i64: 1, 2, 16>}]} {
    %c1_i32 = arith.constant 1 : i32
    %0 = arith.muli %arg0, %c1_i32 : i32
    %c0 = arith.constant 0 : index
    %c0_0 = arith.constant 0 : index
    %c0_1 = arith.constant 0 : index
    %1 = vector.load %arg2[%c0, %c0_0, %c0_1] : memref<1x16x16xf32, #tpu.memory_space<vmem>>, vector<1x16x16xf32>
    %2 = tpu.iota {dimensions = array<i32: 1>} : vector<1x16xi32>
    %c0_i32 = arith.constant 0 : i32
    %3 = arith.addi %0, %c0_i32 : i32
    %4 = arith.index_cast %3 : i32 to index
    %5 = memref.load %arg1[%4] : memref<4xi32, #tpu.memory_space<smem>>
    %6 = vector.broadcast %5 : i32 to vector<1x16xi32>
    %7 = arith.cmpi slt, %2, %6 : vector<1x16xi32>
    %8 = arith.extui %7 : vector<1x16xi1> to vector<1x16xi32>
    %9 = arith.sitofp %8 : vector<1x16xi32> to vector<1x16xf32>
    %c16_i32 = arith.constant 16 : i32
    %10 = arith.minsi %5, %c16_i32 : i32
    %c1_i32_2 = arith.constant 1 : i32
    %11 = arith.maxsi %10, %c1_i32_2 : i32
    %12 = arith.sitofp %11 : i32 to f32
    %cst = arith.constant 1.000000e+00 : f32
    %13 = arith.divf %cst, %12 : f32
    %14 = vector.broadcast %13 : f32 to vector<1x16xf32>
    %15 = arith.mulf %9, %14 : vector<1x16xf32>
    %16 = vector.shape_cast %15 : vector<1x16xf32> to vector<1x1x16xf32>
    "tpu.trace_start"() <{level = 10 : i32, message = "bqt,btc->bqc"}> : () -> ()
    %cst_3 = arith.constant dense<0.000000e+00> : vector<1x1x16xf32>
    %17 = tpu.matmul %16, %1, %cst_3 {dimension_numbers = #tpu.dot_dimension_numbers<[2], [1], [1], [2], [0, 0, 0, 1, 1, 2], [0], [0]>} : vector<1x1x16xf32>, vector<1x16x16xf32>, vector<1x1x16xf32> -> vector<1x1x16xf32>
    "tpu.trace_stop"() : () -> ()
    %18 = vector.shape_cast %17 : vector<1x1x16xf32> to vector<1x16xf32>
    %19 = arith.mulf %1, %1 : vector<1x16x16xf32>
    "tpu.trace_start"() <{level = 10 : i32, message = "bqt,btc->bqc"}> : () -> ()
    %cst_4 = arith.constant dense<0.000000e+00> : vector<1x1x16xf32>
    %20 = tpu.matmul %16, %19, %cst_4 {dimension_numbers = #tpu.dot_dimension_numbers<[2], [1], [1], [2], [0, 0, 0, 1, 1, 2], [0], [0]>} : vector<1x1x16xf32>, vector<1x16x16xf32>, vector<1x1x16xf32> -> vector<1x1x16xf32>
    "tpu.trace_stop"() : () -> ()
    %21 = vector.shape_cast %20 : vector<1x1x16xf32> to vector<1x16xf32>
    %22 = arith.mulf %18, %18 : vector<1x16xf32>
    %23 = arith.subf %21, %22 : vector<1x16xf32>
    %cst_5 = arith.constant 1.000000e-10 : f32
    %24 = vector.broadcast %cst_5 : f32 to vector<1x16xf32>
    %25 = arith.maximumf %23, %24 : vector<1x16xf32>
    %26 = math.sqrt %25 : vector<1x16xf32>
    %c0_6 = arith.constant 0 : index
    %c0_7 = arith.constant 0 : index
    %27 = vector.load %arg4[%c0_6, %c0_7] : memref<1x32xf32, #tpu.memory_space<vmem>>, vector<1x32xf32>
    %c16 = arith.constant 16 : index
    %c0_8 = arith.constant 0 : index
    %28 = vector.load %arg3[%c16, %c0_8] : memref<48x32xf32, #tpu.memory_space<vmem>>, vector<16x32xf32>
    %cst_9 = arith.constant dense<0.000000e+00> : vector<1x32xf32>
    %29 = tpu.matmul %18, %28, %cst_9 {dimension_numbers = #tpu.dot_dimension_numbers<[1], [0], [0], [1], [0, 0, 1, 1], [], []>} : vector<1x16xf32>, vector<16x32xf32>, vector<1x32xf32> -> vector<1x32xf32>
    %30 = arith.addf %27, %29 : vector<1x32xf32>
    %c32 = arith.constant 32 : index
    %c0_10 = arith.constant 0 : index
    %31 = vector.load %arg3[%c32, %c0_10] : memref<48x32xf32, #tpu.memory_space<vmem>>, vector<16x32xf32>
    %cst_11 = arith.constant dense<0.000000e+00> : vector<1x32xf32>
    %32 = tpu.matmul %26, %31, %cst_11 {dimension_numbers = #tpu.dot_dimension_numbers<[1], [0], [0], [1], [0, 0, 1, 1], [], []>} : vector<1x16xf32>, vector<16x32xf32>, vector<1x32xf32> -> vector<1x32xf32>
    %33 = arith.addf %30, %32 : vector<1x32xf32>
    %34 = vector.shape_cast %1 : vector<1x16x16xf32> to vector<16x16xf32>
    %c0_12 = arith.constant 0 : index
    %c0_13 = arith.constant 0 : index
    %35 = vector.load %arg3[%c0_12, %c0_13] : memref<48x32xf32, #tpu.memory_space<vmem>>, vector<16x32xf32>
    %cst_14 = arith.constant dense<0.000000e+00> : vector<16x32xf32>
    %36 = tpu.matmul %34, %35, %cst_14 {dimension_numbers = #tpu.dot_dimension_numbers<[1], [0], [0], [1], [0, 0, 1, 1], [], []>} : vector<16x16xf32>, vector<16x32xf32>, vector<16x32xf32> -> vector<16x32xf32>
    %37 = vector.shape_cast %36 : vector<16x32xf32> to vector<1x16x32xf32>
    %38 = vector.shape_cast %33 : vector<1x32xf32> to vector<1x1x32xf32>
    %39 = vector.broadcast %38 : vector<1x1x32xf32> to vector<1x16x32xf32>
    %40 = arith.addf %37, %39 : vector<1x16x32xf32>
    %cst_15 = arith.constant 0.000000e+00 : f32
    %41 = vector.broadcast %cst_15 : f32 to vector<1x16x32xf32>
    %42 = arith.maximumf %40, %41 : vector<1x16x32xf32>
    %c0_16 = arith.constant 0 : index
    %c0_17 = arith.constant 0 : index
    %43 = vector.load %arg5[%c0_16, %c0_17] : memref<1x32xf32, #tpu.memory_space<vmem>>, vector<1x32xf32>
    %44 = vector.shape_cast %43 : vector<1x32xf32> to vector<1x1x32xf32>
    %45 = vector.broadcast %44 : vector<1x1x32xf32> to vector<1x16x32xf32>
    %46 = arith.mulf %42, %45 : vector<1x16x32xf32>
    %c0_18 = arith.constant 0 : index
    %c0_19 = arith.constant 0 : index
    %47 = vector.load %arg6[%c0_18, %c0_19] : memref<1x32xf32, #tpu.memory_space<vmem>>, vector<1x32xf32>
    %48 = vector.shape_cast %47 : vector<1x32xf32> to vector<1x1x32xf32>
    %49 = vector.broadcast %48 : vector<1x1x32xf32> to vector<1x16x32xf32>
    %50 = arith.addf %46, %49 : vector<1x16x32xf32>
    %51 = math.tanh %50 : vector<1x16x32xf32>
    %52 = vector.shape_cast %51 : vector<1x16x32xf32> to vector<16x32xf32>
    %c0_20 = arith.constant 0 : index
    %c0_21 = arith.constant 0 : index
    %53 = vector.load %arg7[%c0_20, %c0_21] : memref<32x16xf32, #tpu.memory_space<vmem>>, vector<32x16xf32>
    %cst_22 = arith.constant dense<0.000000e+00> : vector<16x16xf32>
    %54 = tpu.matmul %52, %53, %cst_22 {dimension_numbers = #tpu.dot_dimension_numbers<[1], [0], [0], [1], [0, 0, 1, 1], [], []>} : vector<16x32xf32>, vector<32x16xf32>, vector<16x16xf32> -> vector<16x16xf32>
    %c0_23 = arith.constant 0 : index
    %c0_24 = arith.constant 0 : index
    %55 = vector.load %arg8[%c0_23, %c0_24] : memref<1x16xf32, #tpu.memory_space<vmem>>, vector<1x16xf32>
    %56 = vector.broadcast %55 : vector<1x16xf32> to vector<16x16xf32>
    %57 = arith.addf %54, %56 : vector<16x16xf32>
    %58 = vector.shape_cast %57 : vector<16x16xf32> to vector<1x16x16xf32>
    %59 = vector.shape_cast %9 : vector<1x16xf32> to vector<1x16x1xf32>
    %cst_25 = arith.constant 0.000000e+00 : f32
    %60 = vector.broadcast %cst_25 : f32 to vector<1x16x1xf32>
    %61 = arith.cmpf ogt, %59, %60 : vector<1x16x1xf32>
    %cst_26 = arith.constant -1.000000e+30 : f32
    %62 = vector.shape_cast %61 : vector<1x16x1xi1> to vector<1x16x1xi1>
    %63 = vector.broadcast %62 : vector<1x16x1xi1> to vector<1x16x16xi1>
    %64 = vector.broadcast %cst_26 : f32 to vector<1x16x16xf32>
    %65 = arith.select %63, %58, %64 : vector<1x16x16xi1>, vector<1x16x16xf32>
    %cst_27 = arith.constant dense<0xFF800000> : vector<1x16xf32>
    %66 = vector.multi_reduction <maximumf>, %65, %cst_27 [1] : vector<1x16x16xf32> to vector<1x16xf32>
    %67 = vector.shape_cast %66 : vector<1x16xf32> to vector<1x1x16xf32>
    %68 = vector.broadcast %67 : vector<1x1x16xf32> to vector<1x16x16xf32>
    %69 = arith.subf %65, %68 : vector<1x16x16xf32>
    %70 = math.exp %69 : vector<1x16x16xf32>
    %cst_28 = arith.constant dense<0.000000e+00> : vector<1x16xf32>
    %71 = vector.multi_reduction <add>, %70, %cst_28 [1] : vector<1x16x16xf32> to vector<1x16xf32>
    %72 = vector.shape_cast %71 : vector<1x16xf32> to vector<1x1x16xf32>
    %73 = tpu.reciprocal %72 {approx = true} : vector<1x1x16xf32> -> vector<1x1x16xf32>
    %74 = vector.broadcast %73 : vector<1x1x16xf32> to vector<1x16x16xf32>
    %75 = arith.mulf %70, %74 : vector<1x16x16xf32>
    %76 = arith.mulf %75, %1 : vector<1x16x16xf32>
    %cst_29 = arith.constant dense<0.000000e+00> : vector<1x16xf32>
    %77 = vector.multi_reduction <add>, %76, %cst_29 [1] : vector<1x16x16xf32> to vector<1x16xf32>
    %78 = arith.mulf %76, %1 : vector<1x16x16xf32>
    %cst_30 = arith.constant dense<0.000000e+00> : vector<1x16xf32>
    %79 = vector.multi_reduction <add>, %78, %cst_30 [1] : vector<1x16x16xf32> to vector<1x16xf32>
    %80 = arith.mulf %77, %77 : vector<1x16xf32>
    %81 = arith.subf %79, %80 : vector<1x16xf32>
    %cst_31 = arith.constant 1.000000e-10 : f32
    %82 = vector.broadcast %cst_31 : f32 to vector<1x16xf32>
    %83 = arith.maximumf %81, %82 : vector<1x16xf32>
    %84 = math.sqrt %83 : vector<1x16xf32>
    %85 = vector.shape_cast %77 : vector<1x16xf32> to vector<1x1x16xf32>
    %c0_32 = arith.constant 0 : index
    %c0_33 = arith.constant 0 : index
    %c0_34 = arith.constant 0 : index
    %86 = vector.load %arg9[%c0_32, %c0_33, %c0_34] : memref<1x2x16xf32, #tpu.memory_space<vmem>>, vector<1x1x16xf32>
    tpu.vector_store %arg9[%c0_32, %c0_33, %c0_34], %85 {strides = array<i32>} : memref<1x2x16xf32, #tpu.memory_space<vmem>>, vector<1x1x16xf32>,
    %87 = vector.shape_cast %84 : vector<1x16xf32> to vector<1x1x16xf32>
    %c0_35 = arith.constant 0 : index
    %c1 = arith.constant 1 : index
    %c0_36 = arith.constant 0 : index
    %88 = vector.load %arg9[%c0_35, %c1, %c0_36] : memref<1x2x16xf32, #tpu.memory_space<vmem>>, vector<1x1x16xf32>
    tpu.vector_store %arg9[%c0_35, %c1, %c0_36], %87 {strides = array<i32>} : memref<1x2x16xf32, #tpu.memory_space<vmem>>, vector<1x1x16xf32>,
    return
  }
  func.func @transform_0(%arg0: i32, %arg1: memref<4xi32, #tpu.memory_space<smem>>) -> (i32, i32, i32) {
    %c0_i32 = arith.constant 0 : i32
    %c0_i32_0 = arith.constant 0 : i32
    %c0_i32_1 = arith.constant 0 : i32
    return %arg0, %c0_i32, %c0_i32_0 : i32, i32, i32
  }
  func.func @transform_1(%arg0: i32, %arg1: memref<4xi32, #tpu.memory_space<smem>>) -> (i32, i32) {
    %c0_i32 = arith.constant 0 : i32
    %c0_i32_0 = arith.constant 0 : i32
    %c0_i32_1 = arith.constant 0 : i32
    return %c0_i32, %c0_i32_0 : i32, i32
  }
  func.func @transform_2(%arg0: i32, %arg1: memref<4xi32, #tpu.memory_space<smem>>) -> (i32, i32) {
    %c0_i32 = arith.constant 0 : i32
    %c0_i32_0 = arith.constant 0 : i32
    %c0_i32_1 = arith.constant 0 : i32
    return %c0_i32, %c0_i32_0 : i32, i32
  }
  func.func @transform_3(%arg0: i32, %arg1: memref<4xi32, #tpu.memory_space<smem>>) -> (i32, i32) {
    %c0_i32 = arith.constant 0 : i32
    %c0_i32_0 = arith.constant 0 : i32
    %c0_i32_1 = arith.constant 0 : i32
    return %c0_i32, %c0_i32_0 : i32, i32
  }
  func.func @transform_4(%arg0: i32, %arg1: memref<4xi32, #tpu.memory_space<smem>>) -> (i32, i32) {
    %c0_i32 = arith.constant 0 : i32
    %c0_i32_0 = arith.constant 0 : i32
    %c0_i32_1 = arith.constant 0 : i32
    return %c0_i32, %c0_i32_0 : i32, i32
  }
  func.func @transform_5(%arg0: i32, %arg1: memref<4xi32, #tpu.memory_space<smem>>) -> (i32, i32) {
    %c0_i32 = arith.constant 0 : i32
    %c0_i32_0 = arith.constant 0 : i32
    %c0_i32_1 = arith.constant 0 : i32
    return %c0_i32, %c0_i32_0 : i32, i32
  }
  func.func @transform_6(%arg0: i32, %arg1: memref<4xi32, #tpu.memory_space<smem>>) -> (i32, i32) {
    %c0_i32 = arith.constant 0 : i32
    %c0_i32_0 = arith.constant 0 : i32
    %c0_i32_1 = arith.constant 0 : i32
    return %c0_i32, %c0_i32_0 : i32, i32
  }
  func.func @transform_7(%arg0: i32, %arg1: memref<4xi32, #tpu.memory_space<smem>>) -> (i32, i32, i32) {
    %c0_i32 = arith.constant 0 : i32
    %c0_i32_0 = arith.constant 0 : i32
    %c0_i32_1 = arith.constant 0 : i32
    return %arg0, %c0_i32, %c0_i32_0 : i32, i32, i32
  }
}

</mosaic_0001>

<bundles_post_ra>
// kernel: tpu_custom_call.1
= control target key start
LH: loop header
LB: loop body
LE: loop exit
PB: predicated region body
PF: predicated region fallthrough
CT: control target
= control target key end

     0   :  { %s1471_s0 = inlined_call_operand.vmem [shape: s32[4], index: 0, kind: input, shape index: {}]   ;;  %s1472_s1 = inlined_call_operand.vmem [shape: f32[4,16,16], index: 1, kind: input, shape index: {}]   ;;  %s1473_s2 = inlined_call_operand.vmem [shape: f32[48,32], index: 2, kind: input, shape index: {}]   ;;  %s1474_s3 = inlined_call_operand.vmem [shape: f32[1,32], index: 3, kind: input, shape index: {}]   ;;  %s1475_s4 = inlined_call_operand.vmem [shape: f32[1,32], index: 4, kind: input, shape index: {}]   ;;  %s1476_s5 = inlined_call_operand.vmem [shape: f32[1,32], index: 5, kind: input, shape index: {}]   ;;  %s1477_s6 = inlined_call_operand.vmem [shape: f32[32,16], index: 6, kind: input, shape index: {}]   ;;  %s1478_s7 = inlined_call_operand.vmem [shape: f32[1,16], index: 7, kind: input, shape index: {}]   ;;  %s1479_s8 = inlined_call_operand.hbm [shape: f32[4,2,16], index: 8, kind: output, shape index: {}]  }
   0x1   :  { %s13_s29 = sshll.u32 %s1471_s0, 4  ;;  %s14_s29 = int_to_ptr.vmem [resolvable:$true] %s13_s29 }
   0x2   :  { %s1155_s30 = scalar_lea.vmem %s14_s29, 16  ;;  %p1160_p1 = scmp.lt.s32.totalorder %s14_s29, %s14_s29 }
   0x3   :  { %p1156_p0 = scmp.ne.s32.totalorder %s14_s29, %s1155_s30  ;;  %p1161_p2 = scmp.lt.s32.totalorder %s1155_s30, %s1155_s30 }
   0x5   :  { %p1162_p3 = por %p1161_p2, %p1160_p1 }
   0x7   :  { %p1163_p4 = pnand %p1162_p3, %p1156_p0 }
   0x9   :  { %1166 = shalt.err (!%p1163_p4)  }
   0xa   :  { %s1233_s9 = smov [#allocation3]  }
   0xb   :  { %16 = dma.vmem_to_smem %s14_s29, 16, %s1233_s9, [#allocation2] }
   0xc   :  { %1211 = dma.done.wait [#allocation2], 16 }
   0xd   :  { %1212 = vsyncadd [#allocation2], 4294967280 }
   0xe   :  { %18 = sfence }
   0xf   :  { %19 = vsyncpa [#allocation5], 0 }
  0x10   :  { %21 = vsyncpa [#allocation5 + $0x1], 0  ;;  %s1286_s10 = smov 0   ;;  %s1288_s11 = smov 0  }
  0x11   :  { %s1290_s0 = smov 0   ;;  %s1292_s12 = smov 0  }
  0x12 LB: > { %s1307_s13 = sadd.s32 4294967295, %s1231_s12   ;;  %s968_s14 = sadd.s32 4294967294, %s1231_s12   ;;  %s1231_s12 = sphi %s1292_s12, %s1485_s12   ;;  %s1227_s0 = sphi %s1290_s0, %s1484_s0   ;;  %s1223_s11 = sphi %s1288_s11, %s1483_s11   ;;  %s1219_s10 = sphi %s1286_s10, %s1482_s10  }
  0x13   : > { %s1311_s15 = sadd.s32 1, %s1231_s12   ;;  %s186_s16 = sadd.s32 1, %s1227_s0 }
  0x14   : > { %s183_s17 = ssub.s32 %s1231_s12, %s1311_s15  ;;  %p196_p5 = scmp.ne.s32.totalorder %s1227_s0, %s1223_s11 }
  0x15   : > { %p184_p6 = scmp.eq.s32.totalorder %s183_s17, 0  ;;  %p197_p7 = scmp.eq.s32.totalorder %s1307_s13, 3 }
  0x16   : > { %p202_p8 = scmp.ne.s32.totalorder %s1223_s11, %s1219_s10  ;;  %p203_p9 = scmp.eq.s32.totalorder %s968_s14, 3 }
  0x17   : > { %s1322_s18 = scalar_select %p184_p6, %s1227_s0, %s186_s16  }
  0x18   : > { %p1324_p10 = por %p197_p7, %p196_p5  ;;  %p1328_p11 = por %p203_p9, %p202_p8 }
  0x19   : > { %p971_p12 = scmp.ge.s32.totalorder %s1231_s12, 1  ;;  %p247_p13 = scmp.lt.s32.totalorder %s1231_s12, 5 }
  0x1b   : > { %p248_p0 = pnand %p971_p12, %p247_p13 }
  0x1c   : > { %s288_s21 = sld [smem:[#allocation3 + %s1307_s13]] (!%p248_p0)  ;;  %v286_v0 = vlaneseq (!%p248_p0)  ;;  %p279_p1 = scmp.lt.s32.totalorder (!%p248_p0), %s1307_s13, 3  ;;  %v1234_v1 = vmov (!%p248_p0), 0.0|0.0   ;;  %vm1235_vm0 = vmmov (!%p248_p0), 0   ;;  %v1236_v2 = vmov (!%p248_p0), 0.0   ;;  %v460_v14 = vld [vmem:[%s1473_s2 + $0x10] sm:$0xff] (!%p248_p0) }
  0x1d   : > { %251 = sbr.rel (%p248_p0) target bundleno = 903 (0x387), region = 48  ;;  %1067 = vmatprep.subr.bf16.mxu0 (!%p248_p0), %v1234_v1  ;;  %1070 = vmatprep.subr.bf16.mxu1 (!%p248_p0), %v1234_v1  ;;  %v461_v15 = vld [vmem:[%s1473_s2 + $0x18] sm:$0xff] (!%p248_p0)  ;;  %vm303_vm2 = vcmask (!%p248_p0), 130048   ;;  %v612_v19 = vld [vmem:[%s1473_s2] sm:$0xff] (!%p248_p0)  ;;  %v613_v20 = vld [vmem:[%s1473_s2 + $0x8] sm:$0xff] (!%p248_p0)  ;;  %vm736_vm5 = vcmask (!%p248_p0), 261120  }
  0x1e   : > { %1025 = vmatprep.mubr.msk.f32.mxu0 (!%p248_p0), %vm1235_vm0, %v1236_v2  ;;  %1032 = vmatprep.mubr.msk.f32.mxu1 (!%p248_p0), %vm1235_vm0, %v1236_v2  ;;  %v287_v3 = vand.u32 (!%p248_p0), 127, %v286_v0  ;;  %v1074_v17 = vpack.c.bf16 (!%p248_p0), %v461_v15, %v460_v14  ;;  %v1079_v21 = vpack.c.bf16 (!%p248_p0), %v613_v20, %v612_v19  ;;  %v536_v22 = vld [vmem:[%s1473_s2 + $0x20] sm:$0xff] (!%p248_p0)  ;;  %v537_v23 = vld [vmem:[%s1473_s2 + $0x28] sm:$0xff] (!%p248_p0)  ;;  %v727_v41 = vld [vmem:[%s1477_s6 + $0x10] sm:$0xff] (!%p248_p0)  ;;  %v697_v45 = vshrl.u32 (!%p248_p0), %v286_v0, 7  ;;  %s276_s29 = sand.u32 (!%p248_p0), 1, %s1223_s11  }
  0x1f   : > { %v1077_v24 = vpack.c.bf16 (!%p248_p0), %v537_v23, %v536_v22  ;;  %v725_v39 = vld [vmem:[%s1477_s6] sm:$0xff] (!%p248_p0)  ;;  %v726_v40 = vld [vmem:[%s1477_s6 + $0x8] sm:$0xff] (!%p248_p0)  ;;  %v728_v43 = vld [vmem:[%s1477_s6 + $0x18] sm:$0xff] (!%p248_p0)  ;;  %s972_s30 = sshll.u32 (!%p248_p0), %s276_s29, 1  ;;  %vm892_vm8 = vcmask (!%p248_p0), 122880   ;;  %s1237_s24 = smov (!%p248_p0), [#allocation4]  }
  0x20   : > { %v1083_v42 = vpack.c.bf16 (!%p248_p0), %v726_v40, %v725_v39  ;;  %v1087_v44 = vpack.c.bf16 (!%p248_p0), %v728_v43, %v727_v41  ;;  %v459_v46 = vld [vmem:[%s1474_s3] sm:$0x1] (!%p248_p0)  ;;  %v698_v47 = vsub.s32 (!%p248_p0), 0, %v697_v45  ;;  %s278_s9 = scalar_lea.vmem (!%p248_p0), [#allocation4], %s972_s30  ;;  %s1171_s25 = sshll.u32 (!%p248_p0), %s1237_s24, 4  ;;  %s1172_s25 = int_to_ptr.vmem [resolvable:$false] %s1171_s25 }
  0x21   : > { %v987_v54 = vld [vmem:[%s1475_s4] ss:$0 sm:$0xff] (!%p248_p0)  ;;  %s909_s16 = sshll.u32 (!%p248_p0), %s278_s9, 4  ;;  %s1428_s16 = int_to_ptr.vmem [resolvable:$true] %s909_s16 }
  0x22   : > { %p293_p2 = scmp.lt.s32.totalorder (!%p248_p0), %s288_s21, 16  ;;  %p976_p3 = scmp.gt.s32.totalorder (!%p248_p0), %s288_s21, 1  ;;  %v289_v4 = vstv (!%p248_p0), %s288_s21  ;;  %v988_v57 = vld [vmem:[%s1476_s5] ss:$0 sm:$0xff] (!%p248_p0) }
  0x23   : > { %vm290_vm1 = vcmp.lt.s32.totalorder (!%p248_p0), %v287_v3, %v289_v4  ;;  %p1174_p7 = scmp.lt.s32.totalorder (!%p248_p0), %s1428_s16, %s1172_s25 }
  0x24   : > { %s280_s22 = scalar_select %p279_p1, %s1307_s13, 3  ;;  %v975_v10 = vsel %vm290_vm1, 1.0, %v1236_v2 }
  0x25   : > { %s1487_s21 = smov (!%p293_p2, %s288_s21), 16  ;;  %819 = vbcast.lane.b32.xlu0 %v975_v10, 256 }
  0x26   : > { %s996_s23 = sshll.u32 %s280_s22, 4  ;;  %s1489_s21 = smov (!%p976_p3, %s1487_s21), 1 }
  0x27   : > { %s283_s26 = scalar_lea.vmem %s1472_s1, %s996_s23  ;;  %s297_s27 = scvt.s32.f32 %s1489_s21 }
  0x28   : > { %v1343_v5 = vld [vmem:[%s283_s26] sm:$0xff]  ;;  %v1345_v6 = vld [vmem:[%s283_s26 + $0x8] sm:$0xff]  ;;  %s1167_s23 = scalar_lea.vmem %s1428_s16, 32  ;;  %s1173_s26 = scalar_lea.vmem %s1172_s25, 64 }
  0x29   : > { %v1068_v7 = vpack.c.bf16 %v1345_v6, %v1343_v5  ;;  %v377_v8 = vmul.f32 %v1343_v5, %v1343_v5  ;;  %v378_v9 = vmul.f32 %v1345_v6, %v1345_v6  ;;  %823 = vbcast.lane.b32.xlu0 %v975_v10, 264  ;;  %v298_v12 = vstv %s297_s27  ;;  %p1168_p4 = scmp.ne.s32.totalorder %s1428_s16, %s1167_s23  ;;  %p1175_p8 = scmp.lt.s32.totalorder %s1173_s26, %s1167_s23 }
  0x2a   : > { %1139 = vrcp.f32 %v298_v12 }
  0x2b   : > { %1069 = vmatpush3.bf16.msra.mxu0 %v1068_v7  ;;  %v1071_v11 = vpack.c.bf16 %v378_v9, %v377_v8  ;;  %p1169_p5 = pnand %p1168_p4, %p1324_p10  ;;  %p1176_p9 = por %p1175_p8, %p1174_p7 }
  0x2c   : > { %1073 = vmatprep.subr.bf16.mxu0 %v1234_v1 }
  0x2d   : > { %1072 = vmatpush3.bf16.msra.mxu1 %v1071_v11  ;;  %p1170_p6 = pneg %p1169_p5 }
  0x2e   : > { %1080 = vmatprep.subr.bf16.mxu1 %v1079_v21 }
  0x2f   : > { %p1177_p12 = pnand %p1176_p9, %p1170_p6 }
  0x34   : > { %v1140_v13 = vpop.eup %1139 }
  0x35   : > { %1094 = vpush %v1140_v13 }
  0x66   : > { %s1095_s14 = spop %1094 }
  0x67   : > { %v301_v16 = vstv %s1095_s14  ;;  %s993_s14 = sshll.u32 %s1307_s13, 5  ;;  %s896_s13 = scalar_lea.sflag [#allocation5], %s276_s29 }
  0x68   : > { %v302_v18 = vmul.f32 %v975_v10, %v301_v16  ;;  %s1426_s22 = scalar_lea.hbm %s1479_s8, %s993_s14 }
  0x6a   : > { %1026 = vmatmul.mubr.msk.f32.vlgmr.msra.gmra.mrb[0].mxu0 %vm303_vm2, %v302_v18  ;;  %1033 = vmatmul.mubr.msk.f32.vlgmr.msra.gmra.mrb[0].mxu1 %vm303_vm2, %v302_v18 }
  0x6b   : > { %1075 = vmatpush3.bf16.msra.mxu0 %v1074_v17  ;;  %1039 = vmatprep.mubr.msk.f32.mxu0 %vm1235_vm0, %v1236_v2 }
  0x6c   : > { %1076 = vmatprep.subr.bf16.mxu0 %v1234_v1  ;;  %1053 = vmatprep.mubr.msk.f32.mxu1 %vm303_vm2, %v1343_v5 }
  0x6d   : > { %1082 = vmatpush3.bf16.msra.mxu1 %v1079_v21 }
  0x6e   : > { %1084 = vmatprep.subr.bf16.mxu1 %v1083_v42 }
  0x70   : > { %1054 = vmatmul.mubr.msk.f32.vlgmr.msra.gmra.mrb[2].mxu1 %vm303_vm2, %v1345_v6 }
  0x71   : > { %1086 = vmatpush3.bf16.msra.mxu1 %v1083_v42 }
  0x72   : > { %1088 = vmatprep.subr.bf16.mxu1 %v1087_v44 }
  0x75   : > { %1090 = vmatpush3.bf16.msra.mxu1 %v1087_v44 }
  0x97   : > { %v820_v0 = vpop.permute.xlu0 %819 }
  0x98   : > { %vm825_vm7 = vcmp.gt.f32.partialorder %v820_v0, 0.0 }
  0x9b   : > { %v824_v1 = vpop.permute.xlu0 %823 }
  0x9c   : > { %vm826_vm6 = vcmp.gt.f32.partialorder %v824_v1, 0.0 }
 0x13d   : > { %v373_v25 = vpop.f32.mrb[0].mxu0  ;;  %v445_v26 = vpop.f32.mrb[0].mxu1 }
 0x13e   : > { %v449_v27 = vmul.f32 %v373_v25, %v373_v25  ;;  %v1027_v28 = vpop.f32.mrb[1].mxu0  ;;  %v1034_v29 = vpop.f32.mrb[1].mxu1  ;;  %1040 = vmatmul.mubr.msk.f32.vlgmr.msra.gmra.mrb[2].mxu0 %vm303_vm2, %v373_v25 }
 0x13f   : > { %1078 = vmatpush3.bf16.msra.mxu0 %v1077_v24  ;;  %1046 = vmatprep.mubr.msk.f32.mxu0 %vm1235_vm0, %v1236_v2  ;;  %v989_v2 = vld [vmem:[%s1478_s7] ss:$0 sm:$0xff] }
 0x140   : > { %v450_v30 = vsub.f32 %v445_v26, %v449_v27 }
 0x142   : > { %v451_v31 = vmax.f32 %v450_v30, 1e-10 }
 0x143   : > { %v1055_v37 = vpop.f32.mrb[2].mxu1 }
 0x144   : > { %1141 = vrsqrt.f32 %v451_v31  ;;  %vm454_vm3 = vcmp.eq.f32.partialorder %v451_v31, inf  ;;  %v457_v34 = vand.u32 2147483648, %v451_v31  ;;  %vm456_vm4 = vcmp.eq.f32.partialorder %v451_v31, 0.0  ;;  %v686_v38 = vpop.f32.mrb[3].mxu1 }
 0x14e   : > { %v1142_v32 = vpop.eup %1141 }
 0x14f   : > { %v453_v33 = vmul.f32 %v1142_v32, %v451_v31 }
 0x151   : > { %v455_v35 = vsel %vm454_vm3, %v451_v31, %v453_v33 }
 0x152   : > { %v458_v36 = vsel %vm456_vm4, %v457_v34, %v455_v35 }
 0x153   : > { %1047 = vmatmul.mubr.msk.f32.vlgmr.msra.gmra.mrb[2].mxu0 %vm303_vm2, %v458_v36 }
 0x226   : > { %v607_v48 = vpop.f32.mrb[2].mxu0 }
 0x227   : > { %v1091_v49 = vadd.f32 %v607_v48, %v459_v46  ;;  %v1048_v50 = vpop.f32.mrb[3].mxu0 }
 0x229   : > { %v699_v51 = vrot.slane %v1091_v49, %v698_v47 }
 0x22b   : > { %v702_v52 = vadd.f32 %v1055_v37, %v699_v51  ;;  %v701_v53 = vadd.f32 %v699_v51, %v686_v38 }
 0x22d   : > { %v704_v55 = vmax.f32 %v702_v52, 0.0  ;;  %v703_v56 = vmax.f32 %v701_v53, 0.0 }
 0x22f   : > { %v713_v58 = vmul.f32 %v987_v54, %v704_v55  ;;  %v712_v59 = vmul.f32 %v987_v54, %v703_v56 }
 0x231   : > { %v722_v60 = vadd.f32 %v988_v57, %v713_v58  ;;  %v721_v61 = vadd.f32 %v988_v57, %v712_v59 }
 0x233   : > { %1143 = vtanh.f32 %v722_v60 }
 0x234   : > { %1145 = vtanh.f32 %v721_v61 }
 0x23d   : > { %v1144_v62 = vpop.eup %1143 }
 0x23e   : > { %v1146_v63 = vpop.eup %1145 }
 0x23f   : > { %1064 = vmatprep.mubr.msk.f32.mxu1 %vm736_vm5, %v1146_v63 }
 0x240   : > { %1065 = vmatmul.mubr.msk.f32.vlgmr.msra.gmra.mrb[4].mxu1 %vm736_vm5, %v1144_v62 }
 0x313   : > { %v1066_v3 = vpop.f32.mrb[4].mxu1 }
 0x314   : > { %v815_v4 = vadd.f32 %v1066_v3, %v989_v2  ;;  %v809_v7 = vpop.f32.mrb[5].mxu1 }
 0x315   : > { %v810_v8 = vadd.f32 %v989_v2, %v809_v7 }
 0x316   : > { %v832_v9 = vsel %vm826_vm6, %v815_v4, -1e+30 }
 0x317   : > { %v834_v10 = vsel %vm303_vm2, %v832_v9, -inf  ;;  %v831_v11 = vsel %vm825_vm7, %v810_v8, -1e+30 }
 0x318   : > { %v833_v12 = vsel %vm303_vm2, %v831_v11, -inf }
 0x319   : > { %v835_v13 = vmax.f32 %v833_v12, %v834_v10 }
 0x31b   : > { %v836_v14 = vrot.slane %v835_v13, 4 }
 0x31d   : > { %v837_v15 = vmax.f32 %v835_v13, %v836_v14 }
 0x31f   : > { %v838_v16 = vrot.slane %v837_v15, 2 }
 0x321   : > { %v839_v17 = vmax.f32 %v837_v15, %v838_v16 }
 0x323   : > { %v840_v18 = vrot.slane %v839_v17, 1 }
 0x325   : > { %v841_v19 = vmax.f32 %v839_v17, %v840_v18 }
 0x327   : > { %v842_v20 = vsub.f32 %v831_v11, %v841_v19  ;;  %v843_v21 = vsub.f32 %v832_v9, %v841_v19 }
 0x329   : > { %v844_v22 = vmul.f32 1.442695, %v842_v20  ;;  %v846_v23 = vmul.f32 1.442695, %v843_v21 }
 0x32b   : > { %1147 = vpow2.f32 %v844_v22 }
 0x32c   : > { %1149 = vpow2.f32 %v846_v23 }
 0x335   : > { %v1148_v24 = vpop.eup %1147 }
 0x336   : > { %v1150_v25 = vpop.eup %1149  ;;  %v848_v26 = vsel %vm303_vm2, %v1148_v24, 0.0 }
 0x337   : > { %v849_v27 = vsel %vm303_vm2, %v1150_v25, 0.0 }
 0x338   : > { %v850_v28 = vadd.f32 %v849_v27, %v848_v26 }
 0x33a   : > { %v851_v29 = vrot.slane %v850_v28, 4 }
 0x33c   : > { %v852_v30 = vadd.f32 %v851_v29, %v850_v28 }
 0x33e   : > { %v853_v31 = vrot.slane %v852_v30, 2 }
 0x340   : > { %v854_v32 = vadd.f32 %v853_v31, %v852_v30 }
 0x342   : > { %v855_v33 = vrot.slane %v854_v32, 1 }
 0x344   : > { %v856_v34 = vadd.f32 %v855_v33, %v854_v32 }
 0x346   : > { %1151 = vrcp.f32 %v856_v34 }
 0x350   : > { %v1152_v35 = vpop.eup %1151 }
 0x351   : > { %v858_v36 = vmul.f32 %v1152_v35, %v1148_v24  ;;  %v859_v37 = vmul.f32 %v1152_v35, %v1150_v25 }
 0x353   : > { %v860_v38 = vmul.f32 %v858_v36, %v1343_v5  ;;  %v861_v39 = vmul.f32 %v859_v37, %v1345_v6 }
 0x355   : > { %v871_v40 = vmul.f32 %v860_v38, %v1343_v5  ;;  %v862_v41 = vsel %vm303_vm2, %v860_v38, 0.0  ;;  %v863_v42 = vsel %vm303_vm2, %v861_v39, 0.0  ;;  %v872_v43 = vmul.f32 %v861_v39, %v1345_v6 }
 0x356   : > { %v864_v44 = vadd.f32 %v863_v42, %v862_v41 }
 0x357   : > { %v873_v45 = vsel %vm303_vm2, %v871_v40, 0.0  ;;  %v874_v46 = vsel %vm303_vm2, %v872_v43, 0.0 }
 0x358   : > { %v865_v47 = vrot.slane %v864_v44, 4  ;;  %v875_v48 = vadd.f32 %v874_v46, %v873_v45 }
 0x35a   : > { %v866_v49 = vadd.f32 %v865_v47, %v864_v44  ;;  %v876_v50 = vrot.slane %v875_v48, 4 }
 0x35c   : > { %v867_v51 = vrot.slane %v866_v49, 2  ;;  %v877_v52 = vadd.f32 %v876_v50, %v875_v48 }
 0x35e   : > { %v868_v5 = vadd.f32 %v867_v51, %v866_v49  ;;  %v878_v53 = vrot.slane %v877_v52, 2 }
 0x360   : > { %v869_v54 = vrot.slane %v868_v5, 1  ;;  %v879_v55 = vadd.f32 %v878_v53, %v877_v52 }
 0x362   : > { %v870_v6 = vadd.f32 %v869_v54, %v868_v5  ;;  %v880_v56 = vrot.slane %v879_v55, 1 }
 0x364   : > { %v881_v57 = vadd.f32 %v880_v56, %v879_v55  ;;  %v882_v58 = vmul.f32 %v870_v6, %v870_v6  ;;  %893 = vst.msk [vmem:[%s278_s9] sm:$0x1] %vm892_vm8, %v870_v6 }
 0x366   : > { %v883_v59 = vsub.f32 %v881_v57, %v882_v58 }
 0x368   : > { %v884_v60 = vmax.f32 %v883_v59, 1e-10 }
 0x36a   : > { %1153 = vrsqrt.f32 %v884_v60  ;;  %vm887_vm9 = vcmp.eq.f32.partialorder %v884_v60, inf  ;;  %v890_v63 = vand.u32 2147483648, %v884_v60  ;;  %vm889_vm10 = vcmp.eq.f32.partialorder %v884_v60, 0.0 }
 0x374   : > { %v1154_v61 = vpop.eup %1153 }
 0x375   : > { %v886_v62 = vmul.f32 %v1154_v61, %v884_v60 }
 0x377   : > { %v888_v0 = vsel %vm887_vm9, %v884_v60, %v886_v62 }
 0x378   : > { %v891_v1 = vsel %vm889_vm10, %v890_v63, %v888_v0 }
 0x379   : > { %894 = vst.msk [vmem:[%s278_s9 + $0x1] sm:$0x1] %vm892_vm8, %v891_v1 }
 0x37a   : > { %1180 = shalt.err (!%p1177_p12)
}
 0x37b   : > { %s1181_s27 = scalar_lea.hbm %s1426_s22, 32  ;;  %s1185_s30 = scalar_lea.hbm %s1479_s8, 128 }
 0x37c   : > { %p1182_p13 = scmp.ne.s32.totalorder %s1426_s22, %s1181_s27  ;;  %p1186_p2 = scmp.lt.u32.totalorder %s1426_s22, %s1479_s8 }
 0x37d   : > { %p1187_p3 = scmp.lt.u32.totalorder %s1185_s30, %s1181_s27  ;;  %p1189_p5 = scmp.lt.u32.totalorder %s1181_s27, %s1426_s22 }
 0x37e   : > { %p1183_p0 = pnand %p1182_p13, %p1324_p10 }
 0x37f   : > { %p1188_p4 = por %p1187_p3, %p1186_p2 }
 0x380   : > { %p1184_p1 = pneg %p1183_p0 }
 0x381   : > { %p1190_p6 = por %p1189_p5, %p1188_p4 }
 0x383   : > { %p1191_p7 = pnand %p1190_p6, %p1184_p1 }
 0x385   : > { %1194 = shalt.err (!%p1191_p7)
}
 0x386   : > { %1096 = dma.vmem_to_hbm [thread:$0]  (%p1324_p10), %s1428_s16, 32, %s1426_s22, %s896_s13  }
 0x387 PF: > { %p1102_p8 = scmp.ge.s32.totalorder %s1231_s12, 2  ;;  %s921_s17 = sand.u32 1, %s1219_s10  }
 0x388   : > { %s922_s21 = scalar_lea.sflag [#allocation5], %s921_s17 }
 0x389   : > { %p1099_p9 = pnand %p1102_p8, %p1328_p11 }
 0x38b   : > { %1214 = dma.done.wait (!%p1099_p9), %s922_s21, 32  }
 0x38c   : > { %1216 = vsyncadd (!%p1099_p9), %s922_s21, 4294967264  ;;  %p24_p12 = scmp.ge.s32.totalorder %s1311_s15, 6   ;;  %s1482_s10 = smov %s1223_s11 }
 0x38d   : > { %s1483_s11 = smov %s1227_s0  ;;  %s1484_s0 = smov %s1322_s18 }
 0x38e   : > { %s1485_s12 = smov %s1311_s15  ;;  %26 = sbr.rel (!%p24_p12) target bundleno = 18 (0x12), region = 83 }
 0x395   :  { %927 = vsyncpa [#allocation5], 1 }
 0x396   :  { %929 = vsyncpa [#allocation5 + $0x1], 1 }

</bundles_post_ra>
